<compile_context>
chip_gen: v7x
topology: tpu7x:2x2x1
jax: 0.10.0
libtpu: 0.0.40
codegen_flags: <defaults>
</compile_context>

<pallas_src>
import jax
import jax.numpy as jnp
from jax.experimental import pallas as pl
from jax.experimental.pallas import tpu as pltpu


def _round_up(n, m):
    return ((n + m - 1) // m) * m


def ae_forward_kernel(x_ref,
                      w1_ref, b1_ref, w2_ref, b2_ref, w3_ref, b3_ref,
                      w4_ref, b4_ref, w5_ref, b5_ref, w6_ref, b6_ref,
                      out_ref):
    x = x_ref[...]

    # ---- encoder ----
    h = jnp.dot(x, w1_ref[...], preferred_element_type=jnp.float32) + b1_ref[...]
    h = jnp.maximum(h, 0.0)
    h = jnp.dot(h, w2_ref[...], preferred_element_type=jnp.float32) + b2_ref[...]
    h = jnp.maximum(h, 0.0)
    z = jnp.dot(h, w3_ref[...], preferred_element_type=jnp.float32) + b3_ref[...]

    # ---- decoder ----
    d = jnp.dot(z, w4_ref[...], preferred_element_type=jnp.float32) + b4_ref[...]
    d = jnp.maximum(d, 0.0)
    d = jnp.dot(d, w5_ref[...], preferred_element_type=jnp.float32) + b5_ref[...]
    d = jnp.maximum(d, 0.0)
    d = jnp.dot(d, w6_ref[...], preferred_element_type=jnp.float32) + b6_ref[...]
    out_ref[...] = jnp.tanh(d)


def ae_forward(x, params, *, tile_rows=1024):
    """x: (B, input_shape) float32. params: list of 6 (W, b) with W shape (in, out)."""
    B, F = x.shape
    F_PAD = _round_up(F, 128)            # lane-dense feature dim (100 -> 128)

    # Batch tile: large enough to amortize per-step overhead and MXU drain latency,
    # small enough (~0.5 MiB per f32 buffer at TB=1024) for v7x's 64 MiB VMEM.
    TB = min(tile_rows, _round_up(B, 8))
    B_PAD = _round_up(B, TB)

    # --- zero-pad input / boundary weights to the padded feature width ---
    x_p = jnp.zeros((B_PAD, F_PAD), jnp.float32).at[:B, :F].set(x)

    (w1, b1), (w2, b2), (w3, b3), (w4, b4), (w5, b5), (w6, b6) = params
    w1_p = jnp.zeros((F_PAD, w1.shape[1]), jnp.float32).at[:F, :].set(w1)  # pad in-rows
    w6_p = jnp.zeros((w6.shape[0], F_PAD), jnp.float32).at[:, :F].set(w6)  # pad out-cols
    b6_p = jnp.zeros((1, F_PAD), jnp.float32).at[:, :F].set(b6)

    flat = [w1_p, b1, w2, b2, w3, b3, w4, b4, w5, b5, w6_p, b6_p]

    # Tiny weights/biases: single full-extent VMEM blocks with constant index maps
    # (resident across batch tiles, not re-fetched per grid step).
    def full_spec(a):
        nd = a.ndim
        return pl.BlockSpec(a.shape, lambda i, nd=nd: (0,) * nd)

    grid = (B_PAD // TB,)
    in_specs = ([pl.BlockSpec((TB, F_PAD), lambda i: (i, 0))]
                + [full_spec(a) for a in flat])
    out_specs = pl.BlockSpec((TB, F_PAD), lambda i: (i, 0))

    out_p = pl.pallas_call(
        ae_forward_kernel,
        out_shape=jax.ShapeDtypeStruct((B_PAD, F_PAD), jnp.float32),
        grid=grid,
        in_specs=in_specs,
        out_specs=out_specs,
        compiler_params=pltpu.CompilerParams(
            # batch tiles are independent -> shard across TensorCores on v7x
            dimension_semantics=("parallel",)),
    )(x_p, *flat)

    return out_p[:B, :F]


def make_params(key, input_shape=100, L1=10, L2=5, n_hidden=3):
    """Deterministic xavier-uniform-like init; biases zero (matches initialize_weights)."""
    dims = [(input_shape, L1), (L1, L2), (L2, n_hidden),      # encoder
            (n_hidden, L2), (L2, L1), (L1, input_shape)]      # decoder
    params = []
    for (fan_in, fan_out) in dims:
        key, sub = jax.random.split(key)
        limit = (6.0 / (fan_in + fan_out)) ** 0.5
        w = jax.random.uniform(sub, (fan_in, fan_out), jnp.float32, -limit, limit)
        b = jnp.zeros((1, fan_out), jnp.float32)
        params.append((w, b))
    return params


def ae_reference(x, params):
    h = x
    # encoder
    h = jnp.maximum(h @ params[0][0] + params[0][1], 0.0)
    h = jnp.maximum(h @ params[1][0] + params[1][1], 0.0)
    z = h @ params[2][0] + params[2][1]
    # decoder
    d = jnp.maximum(z @ params[3][0] + params[3][1], 0.0)
    d = jnp.maximum(d @ params[4][0] + params[4][1], 0.0)
    d = d @ params[5][0] + params[5][1]
    return jnp.tanh(d)


if __name__ == "__main__":
    key = jax.random.PRNGKey(0)
    key, xkey = jax.random.split(key)

    B, input_shape = 8, 100
    x = jax.random.normal(xkey, (B, input_shape), jnp.float32)
    params = make_params(key, input_shape=input_shape, L1=10, L2=5, n_hidden=3)

    out = ae_forward(x, params)
    out = jax.block_until_ready(out)

    ref = ae_reference(x, params)
    assert out.shape == (B, input_shape)
    assert jnp.allclose(out, ref, atol=1e-5, rtol=1e-5), "mismatch vs reference"

    # Also exercise the multi-tile (batch-tiled) path to validate the pipeline.
    key, xkey2 = jax.random.split(key)
    B2 = 2048
    x2 = jax.random.normal(xkey2, (B2, input_shape), jnp.float32)
    out2 = jax.block_until_ready(ae_forward(x2, params, tile_rows=512))
    ref2 = ae_reference(x2, params)
    assert out2.shape == (B2, input_shape)
    assert jnp.allclose(out2, ref2, atol=1e-5, rtol=1e-5), "mismatch vs reference (tiled)"

    print("KERNEL_OK")
</pallas_src>

<mosaic_0001>
module attributes {stable_mosaic.version = 11 : i64} {
  func.func @ae_forward_kernel(%arg0: i32, %arg1: memref<8x128xf32, #tpu.memory_space<vmem>>, %arg2: memref<128x10xf32, #tpu.memory_space<vmem>>, %arg3: memref<1x10xf32, #tpu.memory_space<vmem>>, %arg4: memref<10x5xf32, #tpu.memory_space<vmem>>, %arg5: memref<1x5xf32, #tpu.memory_space<vmem>>, %arg6: memref<5x3xf32, #tpu.memory_space<vmem>>, %arg7: memref<1x3xf32, #tpu.memory_space<vmem>>, %arg8: memref<3x5xf32, #tpu.memory_space<vmem>>, %arg9: memref<1x5xf32, #tpu.memory_space<vmem>>, %arg10: memref<5x10xf32, #tpu.memory_space<vmem>>, %arg11: memref<1x10xf32, #tpu.memory_space<vmem>>, %arg12: memref<10x128xf32, #tpu.memory_space<vmem>>, %arg13: memref<1x128xf32, #tpu.memory_space<vmem>>, %arg14: memref<8x128xf32, #tpu.memory_space<vmem>>) attributes {dimension_semantics = [#tpu.dimension_semantics<parallel>], iteration_bounds = array<i64: 1>, scalar_prefetch = 0 : i64, scratch_operands = 0 : i64, tpu.core_type = #tpu.core_type<tc>, window_params = [{transform_indices = @transform_0, window_bounds = array<i64: 8, 128>}, {pipeline_mode = #tpu.pipeline_mode<synchronous>, transform_indices = @transform_1, window_bounds = array<i64: 128, 10>}, {pipeline_mode = #tpu.pipeline_mode<synchronous>, transform_indices = @transform_2, window_bounds = array<i64: 1, 10>}, {pipeline_mode = #tpu.pipeline_mode<synchronous>, transform_indices = @transform_3, window_bounds = array<i64: 10, 5>}, {pipeline_mode = #tpu.pipeline_mode<synchronous>, transform_indices = @transform_4, window_bounds = array<i64: 1, 5>}, {pipeline_mode = #tpu.pipeline_mode<synchronous>, transform_indices = @transform_5, window_bounds = array<i64: 5, 3>}, {pipeline_mode = #tpu.pipeline_mode<synchronous>, transform_indices = @transform_6, window_bounds = array<i64: 1, 3>}, {pipeline_mode = #tpu.pipeline_mode<synchronous>, transform_indices = @transform_7, window_bounds = array<i64: 3, 5>}, {pipeline_mode = #tpu.pipeline_mode<synchronous>, transform_indices = @transform_8, window_bounds = array<i64: 1, 5>}, {pipeline_mode = #tpu.pipeline_mode<synchronous>, transform_indices = @transform_9, window_bounds = array<i64: 5, 10>}, {pipeline_mode = #tpu.pipeline_mode<synchronous>, transform_indices = @transform_10, window_bounds = array<i64: 1, 10>}, {pipeline_mode = #tpu.pipeline_mode<synchronous>, transform_indices = @transform_11, window_bounds = array<i64: 10, 128>}, {pipeline_mode = #tpu.pipeline_mode<synchronous>, transform_indices = @transform_12, window_bounds = array<i64: 1, 128>}, {transform_indices = @transform_13, window_bounds = array<i64: 8, 128>}]} {
    %c0 = arith.constant 0 : index
    %c0_0 = arith.constant 0 : index
    %0 = vector.load %arg1[%c0, %c0_0] : memref<8x128xf32, #tpu.memory_space<vmem>>, vector<8x128xf32>
    %c0_1 = arith.constant 0 : index
    %c0_2 = arith.constant 0 : index
    %1 = vector.load %arg2[%c0_1, %c0_2] : memref<128x10xf32, #tpu.memory_space<vmem>>, vector<128x10xf32>
    %cst = arith.constant dense<0.000000e+00> : vector<8x10xf32>
    %2 = tpu.matmul %0, %1, %cst {dimension_numbers = #tpu.dot_dimension_numbers<[1], [0], [0], [1], [0, 0, 1, 1], [], []>} : vector<8x128xf32>, vector<128x10xf32>, vector<8x10xf32> -> vector<8x10xf32>
    %c0_3 = arith.constant 0 : index
    %c0_4 = arith.constant 0 : index
    %3 = vector.load %arg3[%c0_3, %c0_4] : memref<1x10xf32, #tpu.memory_space<vmem>>, vector<1x10xf32>
    %4 = vector.broadcast %3 : vector<1x10xf32> to vector<8x10xf32>
    %5 = arith.addf %2, %4 : vector<8x10xf32>
    %cst_5 = arith.constant 0.000000e+00 : f32
    %6 = vector.broadcast %cst_5 : f32 to vector<8x10xf32>
    %7 = arith.maximumf %5, %6 : vector<8x10xf32>
    %c0_6 = arith.constant 0 : index
    %c0_7 = arith.constant 0 : index
    %8 = vector.load %arg4[%c0_6, %c0_7] : memref<10x5xf32, #tpu.memory_space<vmem>>, vector<10x5xf32>
    %cst_8 = arith.constant dense<0.000000e+00> : vector<8x5xf32>
    %9 = tpu.matmul %7, %8, %cst_8 {dimension_numbers = #tpu.dot_dimension_numbers<[1], [0], [0], [1], [0, 0, 1, 1], [], []>} : vector<8x10xf32>, vector<10x5xf32>, vector<8x5xf32> -> vector<8x5xf32>
    %c0_9 = arith.constant 0 : index
    %c0_10 = arith.constant 0 : index
    %10 = vector.load %arg5[%c0_9, %c0_10] : memref<1x5xf32, #tpu.memory_space<vmem>>, vector<1x5xf32>
    %11 = vector.broadcast %10 : vector<1x5xf32> to vector<8x5xf32>
    %12 = arith.addf %9, %11 : vector<8x5xf32>
    %cst_11 = arith.constant 0.000000e+00 : f32
    %13 = vector.broadcast %cst_11 : f32 to vector<8x5xf32>
    %14 = arith.maximumf %12, %13 : vector<8x5xf32>
    %c0_12 = arith.constant 0 : index
    %c0_13 = arith.constant 0 : index
    %15 = vector.load %arg6[%c0_12, %c0_13] : memref<5x3xf32, #tpu.memory_space<vmem>>, vector<5x3xf32>
    %cst_14 = arith.constant dense<0.000000e+00> : vector<8x3xf32>
    %16 = tpu.matmul %14, %15, %cst_14 {dimension_numbers = #tpu.dot_dimension_numbers<[1], [0], [0], [1], [0, 0, 1, 1], [], []>} : vector<8x5xf32>, vector<5x3xf32>, vector<8x3xf32> -> vector<8x3xf32>
    %c0_15 = arith.constant 0 : index
    %c0_16 = arith.constant 0 : index
    %17 = vector.load %arg7[%c0_15, %c0_16] : memref<1x3xf32, #tpu.memory_space<vmem>>, vector<1x3xf32>
    %18 = vector.broadcast %17 : vector<1x3xf32> to vector<8x3xf32>
    %19 = arith.addf %16, %18 : vector<8x3xf32>
    %c0_17 = arith.constant 0 : index
    %c0_18 = arith.constant 0 : index
    %20 = vector.load %arg8[%c0_17, %c0_18] : memref<3x5xf32, #tpu.memory_space<vmem>>, vector<3x5xf32>
    %cst_19 = arith.constant dense<0.000000e+00> : vector<8x5xf32>
    %21 = tpu.matmul %19, %20, %cst_19 {dimension_numbers = #tpu.dot_dimension_numbers<[1], [0], [0], [1], [0, 0, 1, 1], [], []>} : vector<8x3xf32>, vector<3x5xf32>, vector<8x5xf32> -> vector<8x5xf32>
    %c0_20 = arith.constant 0 : index
    %c0_21 = arith.constant 0 : index
    %22 = vector.load %arg9[%c0_20, %c0_21] : memref<1x5xf32, #tpu.memory_space<vmem>>, vector<1x5xf32>
    %23 = vector.broadcast %22 : vector<1x5xf32> to vector<8x5xf32>
    %24 = arith.addf %21, %23 : vector<8x5xf32>
    %cst_22 = arith.constant 0.000000e+00 : f32
    %25 = vector.broadcast %cst_22 : f32 to vector<8x5xf32>
    %26 = arith.maximumf %24, %25 : vector<8x5xf32>
    %c0_23 = arith.constant 0 : index
    %c0_24 = arith.constant 0 : index
    %27 = vector.load %arg10[%c0_23, %c0_24] : memref<5x10xf32, #tpu.memory_space<vmem>>, vector<5x10xf32>
    %cst_25 = arith.constant dense<0.000000e+00> : vector<8x10xf32>
    %28 = tpu.matmul %26, %27, %cst_25 {dimension_numbers = #tpu.dot_dimension_numbers<[1], [0], [0], [1], [0, 0, 1, 1], [], []>} : vector<8x5xf32>, vector<5x10xf32>, vector<8x10xf32> -> vector<8x10xf32>
    %c0_26 = arith.constant 0 : index
    %c0_27 = arith.constant 0 : index
    %29 = vector.load %arg11[%c0_26, %c0_27] : memref<1x10xf32, #tpu.memory_space<vmem>>, vector<1x10xf32>
    %30 = vector.broadcast %29 : vector<1x10xf32> to vector<8x10xf32>
    %31 = arith.addf %28, %30 : vector<8x10xf32>
    %cst_28 = arith.constant 0.000000e+00 : f32
    %32 = vector.broadcast %cst_28 : f32 to vector<8x10xf32>
    %33 = arith.maximumf %31, %32 : vector<8x10xf32>
    %c0_29 = arith.constant 0 : index
    %c0_30 = arith.constant 0 : index
    %34 = vector.load %arg12[%c0_29, %c0_30] : memref<10x128xf32, #tpu.memory_space<vmem>>, vector<10x128xf32>
    %cst_31 = arith.constant dense<0.000000e+00> : vector<8x128xf32>
    %35 = tpu.matmul %33, %34, %cst_31 {dimension_numbers = #tpu.dot_dimension_numbers<[1], [0], [0], [1], [0, 0, 1, 1], [], []>} : vector<8x10xf32>, vector<10x128xf32>, vector<8x128xf32> -> vector<8x128xf32>
    %c0_32 = arith.constant 0 : index
    %c0_33 = arith.constant 0 : index
    %36 = vector.load %arg13[%c0_32, %c0_33] : memref<1x128xf32, #tpu.memory_space<vmem>>, vector<1x128xf32>
    %37 = vector.broadcast %36 : vector<1x128xf32> to vector<8x128xf32>
    %38 = arith.addf %35, %37 : vector<8x128xf32>
    %39 = math.tanh %38 : vector<8x128xf32>
    %c0_34 = arith.constant 0 : index
    %c0_35 = arith.constant 0 : index
    %40 = vector.load %arg14[%c0_34, %c0_35] : memref<8x128xf32, #tpu.memory_space<vmem>>, vector<8x128xf32>
    tpu.vector_store %arg14[%c0_34, %c0_35], %39 {strides = array<i32>} : memref<8x128xf32, #tpu.memory_space<vmem>>, vector<8x128xf32>,
    return
  }
  func.func @transform_0(%arg0: i32) -> (i32, i32) {
    %c0_i32 = arith.constant 0 : i32
    %c0_i32_0 = arith.constant 0 : i32
    return %arg0, %c0_i32 : i32, i32
  }
  func.func @transform_1(%arg0: i32) -> (i32, i32) {
    %c0_i32 = arith.constant 0 : i32
    %c0_i32_0 = arith.constant 0 : i32
    %c0_i32_1 = arith.constant 0 : i32
    return %c0_i32, %c0_i32_0 : i32, i32
  }
  func.func @transform_2(%arg0: i32) -> (i32, i32) {
    %c0_i32 = arith.constant 0 : i32
    %c0_i32_0 = arith.constant 0 : i32
    %c0_i32_1 = arith.constant 0 : i32
    return %c0_i32, %c0_i32_0 : i32, i32
  }
  func.func @transform_3(%arg0: i32) -> (i32, i32) {
    %c0_i32 = arith.constant 0 : i32
    %c0_i32_0 = arith.constant 0 : i32
    %c0_i32_1 = arith.constant 0 : i32
    return %c0_i32, %c0_i32_0 : i32, i32
  }
  func.func @transform_4(%arg0: i32) -> (i32, i32) {
    %c0_i32 = arith.constant 0 : i32
    %c0_i32_0 = arith.constant 0 : i32
    %c0_i32_1 = arith.constant 0 : i32
    return %c0_i32, %c0_i32_0 : i32, i32
  }
  func.func @transform_5(%arg0: i32) -> (i32, i32) {
    %c0_i32 = arith.constant 0 : i32
    %c0_i32_0 = arith.constant 0 : i32
    %c0_i32_1 = arith.constant 0 : i32
    return %c0_i32, %c0_i32_0 : i32, i32
  }
  func.func @transform_6(%arg0: i32) -> (i32, i32) {
    %c0_i32 = arith.constant 0 : i32
    %c0_i32_0 = arith.constant 0 : i32
    %c0_i32_1 = arith.constant 0 : i32
    return %c0_i32, %c0_i32_0 : i32, i32
  }
  func.func @transform_7(%arg0: i32) -> (i32, i32) {
    %c0_i32 = arith.constant 0 : i32
    %c0_i32_0 = arith.constant 0 : i32
    %c0_i32_1 = arith.constant 0 : i32
    return %c0_i32, %c0_i32_0 : i32, i32
  }
  func.func @transform_8(%arg0: i32) -> (i32, i32) {
    %c0_i32 = arith.constant 0 : i32
    %c0_i32_0 = arith.constant 0 : i32
    %c0_i32_1 = arith.constant 0 : i32
    return %c0_i32, %c0_i32_0 : i32, i32
  }
  func.func @transform_9(%arg0: i32) -> (i32, i32) {
    %c0_i32 = arith.constant 0 : i32
    %c0_i32_0 = arith.constant 0 : i32
    %c0_i32_1 = arith.constant 0 : i32
    return %c0_i32, %c0_i32_0 : i32, i32
  }
  func.func @transform_10(%arg0: i32) -> (i32, i32) {
    %c0_i32 = arith.constant 0 : i32
    %c0_i32_0 = arith.constant 0 : i32
    %c0_i32_1 = arith.constant 0 : i32
    return %c0_i32, %c0_i32_0 : i32, i32
  }
  func.func @transform_11(%arg0: i32) -> (i32, i32) {
    %c0_i32 = arith.constant 0 : i32
    %c0_i32_0 = arith.constant 0 : i32
    %c0_i32_1 = arith.constant 0 : i32
    return %c0_i32, %c0_i32_0 : i32, i32
  }
  func.func @transform_12(%arg0: i32) -> (i32, i32) {
    %c0_i32 = arith.constant 0 : i32
    %c0_i32_0 = arith.constant 0 : i32
    %c0_i32_1 = arith.constant 0 : i32
    return %c0_i32, %c0_i32_0 : i32, i32
  }
  func.func @transform_13(%arg0: i32) -> (i32, i32) {
    %c0_i32 = arith.constant 0 : i32
    %c0_i32_0 = arith.constant 0 : i32
    return %arg0, %c0_i32 : i32, i32
  }
}

</mosaic_0001>

<bundles_post_ra>
// kernel: tpu_custom_call.1
= control target key start
LH: loop header
LB: loop body
LE: loop exit
PB: predicated region body
PF: predicated region fallthrough
CT: control target
= control target key end

     0   :  { %v759_v3 = vmov 0.0|0.0   ;;  %vm760_vm0 = vmmov 0   ;;  %v761_v6 = vmov 0.0   ;;  %s975_s0 = inlined_call_operand.vmem [shape: f32[8,128], index: 0, kind: input, shape index: {}]   ;;  %s976_s1 = inlined_call_operand.vmem [shape: f32[128,10], index: 1, kind: input, shape index: {}]   ;;  %s977_s2 = inlined_call_operand.vmem [shape: f32[1,10], index: 2, kind: input, shape index: {}]   ;;  %s978_s3 = inlined_call_operand.vmem [shape: f32[10,5], index: 3, kind: input, shape index: {}]   ;;  %s979_s4 = inlined_call_operand.vmem [shape: f32[1,5], index: 4, kind: input, shape index: {}]   ;;  %s980_s5 = inlined_call_operand.vmem [shape: f32[5,3], index: 5, kind: input, shape index: {}]   ;;  %s981_s6 = inlined_call_operand.vmem [shape: f32[1,3], index: 6, kind: input, shape index: {}]   ;;  %s982_s7 = inlined_call_operand.vmem [shape: f32[3,5], index: 7, kind: input, shape index: {}]   ;;  %s983_s8 = inlined_call_operand.vmem [shape: f32[1,5], index: 8, kind: input, shape index: {}]   ;;  %s984_s9 = inlined_call_operand.vmem [shape: f32[5,10], index: 9, kind: input, shape index: {}]   ;;  %s985_s10 = inlined_call_operand.vmem [shape: f32[1,10], index: 10, kind: input, shape index: {}]   ;;  %s986_s11 = inlined_call_operand.vmem [shape: f32[10,128], index: 11, kind: input, shape index: {}]   ;;  %s987_s12 = inlined_call_operand.vmem [shape: f32[1,128], index: 12, kind: input, shape index: {}]   ;;  %s988_s13 = inlined_call_operand.hbm [shape: f32[8,128], index: 13, kind: output, shape index: {}]  }
   0x1   :  { %v46_v0 = vld [vmem:[%s976_s1] sm:$0xff]  ;;  %v47_v1 = vld [vmem:[%s976_s1 + $0x8] sm:$0xff]  ;;  %v48_v2 = vld [vmem:[%s976_s1 + $0x10] sm:$0xff]  ;;  %696 = vmatprep.subr.bf16.mxu0 %v759_v3  ;;  %664 = vmatprep.mubr.msk.f32.mxu0 %vm760_vm0, %v761_v6 }
   0x2   :  { %v697_v4 = vpack.c.bf16 %v47_v1, %v46_v0  ;;  %v49_v5 = vld [vmem:[%s976_s1 + $0x18] sm:$0xff]  ;;  %720 = vmatprep.subr.bf16.mxu1 %v759_v3  ;;  %671 = vmatprep.mubr.msk.f32.mxu1 %vm760_vm0, %v761_v6  ;;  %v50_v8 = vld [vmem:[%s976_s1 + $0x20] sm:$0xff]  ;;  %v51_v9 = vld [vmem:[%s976_s1 + $0x28] sm:$0xff] }
   0x3   :  { %v700_v7 = vpack.c.bf16 %v49_v5, %v48_v2 }
   0x4   :  { %698 = vmatpush3.bf16.msra.mxu0 %v697_v4 }
   0x5   :  { %699 = vmatprep.subr.bf16.mxu0 %v759_v3 }
   0x6   :  { %18 = vsyncpa [#allocation3], 0  ;;  %v703_v10 = vpack.c.bf16 %v51_v9, %v50_v8  ;;  %v52_v11 = vld [vmem:[%s976_s1 + $0x30] sm:$0xff]  ;;  %v53_v12 = vld [vmem:[%s976_s1 + $0x38] sm:$0xff]  ;;  %vm153_vm1 = vcmask 1041408   ;;  %vm762_vm2 = vmmov 1  }
   0x7   :  { %v706_v13 = vpack.c.bf16 %v53_v12, %v52_v11  ;;  %v54_v14 = vld [vmem:[%s976_s1 + $0x40] sm:$0xff]  ;;  %v55_v15 = vld [vmem:[%s976_s1 + $0x48] sm:$0xff]  ;;  %v56_v17 = vld [vmem:[%s976_s1 + $0x50] sm:$0xff]  ;;  %vm149_vm4 = vcmask 80896   ;;  %vm240_vm5 = vcmask 1044480   ;;  %vm236_vm6 = vcmask 39936  }
   0x8   :  { %701 = vmatpush3.bf16.msra.mxu0 %v700_v7  ;;  %v709_v16 = vpack.c.bf16 %v55_v15, %v54_v14  ;;  %v57_v18 = vld [vmem:[%s976_s1 + $0x58] sm:$0xff]  ;;  %v58_v20 = vld [vmem:[%s976_s1 + $0x60] sm:$0xff]  ;;  %v59_v21 = vld [vmem:[%s976_s1 + $0x68] sm:$0xff]  ;;  %vm326_vm7 = vcmask 1042432   ;;  %vm322_vm8 = vcmask 23552  }
   0x9   :  { %702 = vmatprep.subr.bf16.mxu0 %v759_v3  ;;  %v712_v19 = vpack.c.bf16 %v57_v18, %v56_v17  ;;  %v715_v22 = vpack.c.bf16 %v59_v21, %v58_v20  ;;  %v60_v23 = vld [vmem:[%s976_s1 + $0x70] sm:$0xff]  ;;  %v61_v24 = vld [vmem:[%s976_s1 + $0x78] sm:$0xff]  ;;  %v45_v26 = vld [vmem:[%s975_s0] sm:$0xff] }
   0xa   :  { %v718_v25 = vpack.c.bf16 %v61_v24, %v60_v23  ;;  %v140_v27 = vld [vmem:[%s978_s3] sm:$0xff]  ;;  %v141_v28 = vld [vmem:[%s978_s3 + $0x8] sm:$0x3]  ;;  %vm904_vm3 = vmpackc.low %vm153_vm1, %vm762_vm2 }
   0xb   :  { %v721_v29 = vpack.c.bf16 %v141_v28, %v140_v27  ;;  %v587_v31 = vld [vmem:[%s977_s2] ss:$0 sm:$0xff]  ;;  %v487_v54 = vld [vmem:[%s986_s11 + $0x8] sm:$0x3] }
   0xc   :  { %704 = vmatpush3.bf16.msra.mxu0 %v703_v10  ;;  %v228_v36 = vld [vmem:[%s980_s5] sm:$0x1f] }
   0xd   :  { %705 = vmatprep.subr.bf16.mxu0 %v759_v3  ;;  %723 = vmatpush3.bf16.msk.msra.mxu1 %vm904_vm3, %v721_v29  ;;  %v588_v37 = vld [vmem:[%s979_s4] ss:$0 sm:$0xff] }
   0xe   :  { %674 = vmatprep.subr.mxu1 %v761_v6  ;;  %v314_v42 = vld [vmem:[%s982_s7] sm:$0x7] }
   0xf   :  { %v591_v43 = vld [vmem:[%s981_s6] ss:$0 sm:$0xff] }
  0x10   :  { %707 = vmatpush3.bf16.msra.mxu0 %v706_v13  ;;  %v401_v47 = vld [vmem:[%s984_s9] sm:$0x1f] }
  0x11   :  { %708 = vmatprep.subr.bf16.mxu0 %v759_v3  ;;  %v594_v48 = vld [vmem:[%s983_s8] ss:$0 sm:$0xff] }
  0x12   :  { %v486_v53 = vld [vmem:[%s986_s11] sm:$0xff]  ;;  %s763_s11 = smov [#allocation2]  }
  0x13   :  { %v725_v55 = vpack.c.bf16 %v487_v54, %v486_v53  ;;  %v597_v56 = vld [vmem:[%s985_s10] ss:$0 sm:$0xff]  ;;  %s579_s24 = sshll.u32 %s763_s11, 4  ;;  %s580_s24 = int_to_ptr.vmem [resolvable:$true] %s579_s24 }
  0x14   :  { %710 = vmatpush3.bf16.msra.mxu0 %v709_v16  ;;  %v600_v61 = vld [vmem:[%s987_s12] ss:$0 sm:$0xff]  ;;  %s735_s10 = scalar_lea.vmem %s580_s24, 128  ;;  %p740_p1 = scmp.lt.s32.totalorder %s580_s24, %s580_s24 }
  0x15   :  { %711 = vmatprep.subr.bf16.mxu0 %v759_v3  ;;  %p736_p0 = scmp.ne.s32.totalorder %s580_s24, %s735_s10  ;;  %p741_p2 = scmp.lt.s32.totalorder %s735_s10, %s735_s10 }
  0x17   :  { %p742_p3 = por %p741_p2, %p740_p1 }
  0x18   :  { %713 = vmatpush3.bf16.msra.mxu0 %v712_v19 }
  0x19   :  { %714 = vmatprep.subr.bf16.mxu0 %v759_v3  ;;  %p743_p4 = pnand %p742_p3, %p736_p0 }
  0x1c   :  { %716 = vmatpush3.bf16.msra.mxu0 %v715_v22 }
  0x1d   :  { %717 = vmatprep.subr.bf16.mxu0 %v759_v3 }
  0x20   :  { %719 = vmatpush3.bf16.msra.mxu0 %v718_v25 }
  0x23   :  { %665 = vmatmul.mubr.f32.vlgmr.msra.gmra.mrb[0].mxu0 %v45_v26 }
  0xf6   :  { %v135_v32 = vpop.f32.mrb[0].mxu0 }
  0xf7   :  { %v136_v33 = vadd.f32 %v587_v31, %v135_v32  ;;  %v666_v34 = vpop.f32.mrb[1].mxu0 }
  0xf9   :  { %v139_v35 = vmax.f32 %v136_v33, 0.0 }
  0xfb   :  { %672 = vmatmul.mubr.msk.f32.vlgmr.msra.gmra.mrb[0].mxu1 %vm149_vm4, %v139_v35 }
  0xfc   :  { %676 = vmatprep.mubr.msk.f32.mxu1 %vm760_vm0, %v761_v6  ;;  %675 = vmatpush3.msk.msra.mxu1 %vm240_vm5, %v228_v36 }
  0xfd   :  { %679 = vmatprep.subr.mxu1 %v761_v6 }
 0x1ce   :  { %v223_v38 = vpop.f32.mrb[0].mxu1 }
 0x1cf   :  { %v224_v39 = vadd.f32 %v588_v37, %v223_v38  ;;  %v673_v40 = vpop.f32.mrb[1].mxu1 }
 0x1d1   :  { %v227_v41 = vmax.f32 %v224_v39, 0.0 }
 0x1d3   :  { %677 = vmatmul.mubr.msk.f32.vlgmr.msra.gmra.mrb[2].mxu1 %vm236_vm6, %v227_v41 }
 0x1d4   :  { %680 = vmatpush3.msk.msra.mxu1 %vm326_vm7, %v314_v42  ;;  %681 = vmatprep.mubr.msk.f32.mxu1 %vm760_vm0, %v761_v6 }
 0x1d5   :  { %684 = vmatprep.subr.mxu1 %v761_v6 }
 0x2a6   :  { %v310_v44 = vpop.f32.mrb[2].mxu1 }
 0x2a7   :  { %v311_v45 = vadd.f32 %v591_v43, %v310_v44  ;;  %v678_v46 = vpop.f32.mrb[3].mxu1 }
 0x2a9   :  { %682 = vmatmul.mubr.msk.f32.vlgmr.msra.gmra.mrb[4].mxu1 %vm322_vm8, %v311_v45 }
 0x2aa   :  { %686 = vmatprep.mubr.msk.f32.mxu1 %vm760_vm0, %v761_v6  ;;  %685 = vmatpush3.msk.msra.mxu1 %vm240_vm5, %v401_v47 }
 0x2ab   :  { %724 = vmatprep.subr.bf16.mxu1 %v759_v3 }
 0x37c   :  { %v396_v49 = vpop.f32.mrb[4].mxu1 }
 0x37d   :  { %v397_v50 = vadd.f32 %v594_v48, %v396_v49  ;;  %v683_v51 = vpop.f32.mrb[5].mxu1 }
 0x37f   :  { %v400_v52 = vmax.f32 %v397_v50, 0.0 }
 0x381   :  { %687 = vmatmul.mubr.msk.f32.vlgmr.msra.gmra.mrb[6].mxu1 %vm236_vm6, %v400_v52 }
 0x382   :  { %693 = vmatprep.mubr.msk.f32.mxu1 %vm760_vm0, %v761_v6  ;;  %727 = vmatpush3.bf16.msk.msra.mxu1 %vm904_vm3, %v725_v55 }
 0x454   :  { %v481_v57 = vpop.f32.mrb[6].mxu1 }
 0x455   :  { %v482_v58 = vadd.f32 %v597_v56, %v481_v57  ;;  %v688_v59 = vpop.f32.mrb[7].mxu1 }
 0x457   :  { %v485_v60 = vmax.f32 %v482_v58, 0.0 }
 0x459   :  { %694 = vmatmul.mubr.msk.f32.vlgmr.msra.gmra.mrb[8].mxu1 %vm149_vm4, %v485_v60 }
 0x52c   :  { %v567_v62 = vpop.f32.mrb[8].mxu1 }
 0x52d   :  { %v568_v63 = vadd.f32 %v600_v61, %v567_v62  ;;  %v695_v0 = vpop.f32.mrb[9].mxu1 }
 0x52f   :  { %733 = vtanh.f32 %v568_v63 }
 0x539   :  { %v734_v1 = vpop.eup %733 }
 0x53a   :  { %572 = vst [vmem:[#allocation2] sm:$0xff] %v734_v1 }
 0x53b   :  { %746 = shalt.err (!%p743_p4)
}
 0x53c   :  { %s747_s12 = scalar_lea.hbm %s988_s13, 128 }
 0x53d   :  { %p748_p5 = scmp.ne.s32.totalorder %s988_s13, %s747_s12  ;;  %p751_p6 = scmp.lt.u32.totalorder %s747_s12, %s988_s13 }
 0x53f   :  { %p753_p7 = pnand %p751_p6, %p748_p5 }
 0x541   :  { %756 = shalt.err (!%p753_p7)
}
 0x542   :  { %582 = dma.vmem_to_hbm [thread:$0]  %s580_s24, 128, %s988_s13, [#allocation3]  }
 0x543   :  { %757 = dma.done.wait [#allocation3], 128  }
 0x544   :  { %758 = vsyncadd [#allocation3], 4294967168 }
 0x545   :  { %586 = vsyncpa [#allocation3], 1 }

</bundles_post_ra>
